<compile_context>
chip_gen: v5e
topology: v5e:2x2
jax: 0.10.0
libtpu: 0.0.40
codegen_flags: <defaults>
</compile_context>

<pallas_src>
import functools

import jax
import jax.numpy as jnp
from jax import lax
from jax.experimental import pallas as pl
from jax.experimental.pallas import tpu as pltpu


def _round_up(x, m):
    return ((x + m - 1) // m) * m


# ---------------------------------------------------------------------------
# Per-generation hardware sizing
# ---------------------------------------------------------------------------
_VMEM_BY_GEN = {"v7": 64 << 20, "v6": 128 << 20, "v5": 128 << 20, "v4": 128 << 20}


def _device_kind():
    try:
        return jax.devices()[0].device_kind.lower()
    except Exception:
        return ""


def _vmem_capacity_bytes():
    """Explicit per-generation table; fall back to get_tpu_info, then 64 MiB."""
    kind = _device_kind()
    for tag, cap in _VMEM_BY_GEN.items():
        if tag in kind:
            return cap
    try:
        return int(pltpu.get_tpu_info().vmem_capacity_bytes)
    except Exception:
        return 64 << 20  # conservative: v7x per-TensorCore VMEM


def _num_tensorcores():
    # v7x exposes 2 TensorCores per chip behind one device; earlier gens are 1.
    return 2 if "v7" in _device_kind() else 1


def _vmem_config():
    """(tile_budget_bytes, vmem_limit_bytes) for double-buffered tiles."""
    cap = _vmem_capacity_bytes()
    tile_budget = int(cap * 0.40)                       # double-buffered working set
    vmem_limit = min(int(cap * 0.75), 98 * 1024 * 1024)  # scoped limit < physical
    return tile_budget, vmem_limit


def _choose_tile(n_rows, k, hp, path_itemsize, budget_bytes, n_cores):
    """Largest row tile (multiple of 128) whose double-buffered set fits VMEM."""
    tn = 128
    for cand in (16384, 8192, 4096, 2048, 1024, 512, 256, 128):
        need = (2 * cand * k * path_itemsize   # path tile, 2 pipeline buffers
                + 2 * hp * cand * 4            # f32 output tile, 2 buffers
                + 2 * cand * 4                 # dist tile, 2 buffers
                + 2 * hp * k * 4)              # embedding matrix (resident)
        if need <= budget_bytes:
            tn = cand
            break
    # Never tile past the (128-rounded) row count.
    tn = min(tn, _round_up(max(n_rows, 1), 128))
    # v7x: keep >= 2*n_cores grid steps so the "parallel" axis actually splits
    # across both TensorCores (a grid of 1 serializes onto one TC).
    if n_cores > 1:
        min_steps = 2 * n_cores
        if n_rows > min_steps * 128:
            tn = min(tn, _round_up(-(-n_rows // min_steps), 128))
    return tn


# ---------------------------------------------------------------------------
# Kernel
# ---------------------------------------------------------------------------
def edge_encoder_kernel(emb_ref, path_ref, dist_ref, out_ref, *, max_len,
                        compute_dtype, approx_div):
    # emb_ref : (Hp, K)   (l,d)-flattened embeddings, heads (zero-padded to Hp=8)
    # path_ref: (tn, K)   flattened path features for tn (b,x,y) rows (raw dtype)
    # dist_ref: (1, tn)   raw shortest-path distances, rows on the lane axis
    # out_ref : (Hp, tn)  per-head encodings, rows on the lane axis (lane-dense)
    emb = emb_ref[...]
    path = path_ref[...]
    if emb.dtype != compute_dtype:
        emb = emb.astype(compute_dtype)
    if path.dtype != compute_dtype:            # cast (if any) right before the dot
        path = path.astype(compute_dtype)

    # A.B^T with the big (tn, K) operand as the rhs contracted on its last
    # (lane) dim -- the flash-attention q.k^T form.  Mosaic folds the rhs
    # transpose into the MXU weight load; no per-tile XLU vxpose of the path
    # tile is generated for this orientation.
    acc = lax.dot_general(
        emb, path,
        dimension_numbers=(((1,), (1,)), ((), ())),
        preferred_element_type=jnp.float32)              # (Hp, tn), f32 accumulate

    # torch.clamp(dist, min=1, max=max_len); clamp/divide stay in f32.
    d = jnp.clip(dist_ref[...].astype(jnp.float32), 1.0, float(max_len))
    # approx=True -> EUP vrcp (free slot), used only for the bf16 opt-in path;
    # exact reciprocal for f32 reference parity.
    out_ref[...] = (acc * pl.reciprocal(d, approx=approx_div)).astype(out_ref.dtype)


# ---------------------------------------------------------------------------
# Wrapper
# ---------------------------------------------------------------------------
def edge_encoder(dist, path_data, emb_weight, *, max_len, num_heads,
                 compute_dtype=jnp.float32):
    """dist: (B, X, Y); path_data: (B, X, Y, L, D); emb_weight: (L*H, D)."""
    B, X, Y, L, D = path_data.shape
    assert L == max_len
    H = num_heads
    N = B * X * Y
    K = L * D
    compute_dtype = jnp.dtype(compute_dtype)
    approx_div = compute_dtype != jnp.dtype(jnp.float32)
    Hp = _round_up(H, 8)  # full-sublane lhs tile + unmasked output stores
    # TODO(synk): tile K with a VMEM f32 accumulator (trailing "arbitrary" grid
    # axis) if L*D ever grows past the per-tile VMEM budget; not needed here.

    tile_budget, vmem_limit = _vmem_config()
    tn = _choose_tile(N, K, Hp, path_data.dtype.itemsize, tile_budget,
                      _num_tensorcores())
    grid = (pl.cdiv(N, tn),)   # partial last block is clipped by Pallas; no pad copy

    # Pure views only -- no casts, no pads over the dominant path stream.
    path_flat = path_data.reshape(N, K)                         # (N, K), free
    dist_flat = dist.reshape(1, N)                              # (1, N), free
    # (L*H, D) -> (L, H, D) -> (H, L, D) -> (H, K): emb[h, l*D+d] = W[l*H+h, d]
    emb = emb_weight.reshape(L, H, D).transpose(1, 0, 2).reshape(H, K)
    if Hp != H:
        emb = jnp.pad(emb, ((0, Hp - H), (0, 0)))               # tiny (Hp x K)

    out_hn = pl.pallas_call(
        functools.partial(edge_encoder_kernel, max_len=max_len,
                          compute_dtype=compute_dtype, approx_div=approx_div),
        out_shape=jax.ShapeDtypeStruct((Hp, N), jnp.float32),
        grid_spec=pltpu.PrefetchScalarGridSpec(
            num_scalar_prefetch=0,
            grid=grid,
            in_specs=[
                pl.BlockSpec((Hp, K), lambda i: (0, 0)),      # embedding (resident)
                pl.BlockSpec((tn, K), lambda i: (i, 0)),      # path rows tile
                pl.BlockSpec((1, tn), lambda i: (0, i)),      # distances tile
            ],
            out_specs=pl.BlockSpec((Hp, tn), lambda i: (0, i)),   # lane-dense output
        ),
        compiler_params=pltpu.CompilerParams(
            dimension_semantics=("parallel",),
            vmem_limit_bytes=vmem_limit),
    )(emb, path_flat, dist_flat)

    # Small (Hp, N) -> (N, H) transpose back in the wrapper (~3-9% of the
    # path_data traffic; cheap vs the input stream).
    return out_hn[:H].T.reshape(B, X, Y, H)


# ---------------------------------------------------------------------------
# Reference + self-test
# ---------------------------------------------------------------------------
def _reference(dist, path_data, emb_weight, *, max_len, num_heads):
    L, H = max_len, num_heads
    D = emb_weight.shape[-1]
    edge_embedding = emb_weight.reshape(L, H, D)
    num = jnp.einsum("bxyld,lhd->bxyh", path_data.astype(jnp.float32),
                     edge_embedding.astype(jnp.float32))
    d = jnp.clip(dist.astype(jnp.float32), 1.0, float(max_len))
    return num / d[..., None]


if __name__ == "__main__":
    # Small shapes consistent with the module's forward:
    #   B=2 graphs, X=Y=8 nodes, max_len(L)=4, feat_dim(D)=32, num_heads(H)=4
    B, X, Y = 2, 8, 8
    MAX_LEN, FEAT_DIM, NUM_HEADS = 4, 32, 4

    key = jax.random.PRNGKey(0)
    k_path, k_dist, k_emb, k_path2, k_dist2 = jax.random.split(key, 5)

    path_data = jax.random.normal(k_path, (B, X, Y, MAX_LEN, FEAT_DIM), dtype=jnp.float32)
    # integer distances incl. values outside [1, max_len] to exercise the clamp
    dist = jax.random.randint(k_dist, (B, X, Y), minval=0, maxval=MAX_LEN + 3,
                              dtype=jnp.int32)
    # nn.Embedding default init ~ N(0, 1)
    emb_weight = jax.random.normal(k_emb, (MAX_LEN * NUM_HEADS, FEAT_DIM),
                                   dtype=jnp.float32)

    ref = _reference(dist, path_data, emb_weight, max_len=MAX_LEN, num_heads=NUM_HEADS)

    # 1) default f32 compute path: PyTorch-parity comparison.
    out_f32 = edge_encoder(dist, path_data, emb_weight, max_len=MAX_LEN,
                           num_heads=NUM_HEADS)
    out_f32 = jax.block_until_ready(out_f32)
    assert out_f32.shape == (B, X, Y, NUM_HEADS)
    assert jnp.allclose(out_f32, ref, atol=2e-4, rtol=2e-4)

    # 2) explicit bf16 opt-in (in-kernel cast before the dot, f32 accumulate).
    out_bf16 = edge_encoder(dist, path_data, emb_weight, max_len=MAX_LEN,
                            num_heads=NUM_HEADS, compute_dtype=jnp.bfloat16)
    out_bf16 = jax.block_until_ready(out_bf16)
    rel = jnp.linalg.norm(out_bf16 - ref) / jnp.linalg.norm(ref)
    assert float(rel) < 2e-2

    # 3) ragged row count (N = 35, not a multiple of the tile): exercises the
    #    partial-last-block path (no wrapper padding copy anymore).
    B2, X2, Y2 = 1, 5, 7
    path2 = jax.random.normal(k_path2, (B2, X2, Y2, MAX_LEN, FEAT_DIM), dtype=jnp.float32)
    dist2 = jax.random.randint(k_dist2, (B2, X2, Y2), minval=0, maxval=MAX_LEN + 3,
                               dtype=jnp.int32)
    ref2 = _reference(dist2, path2, emb_weight, max_len=MAX_LEN, num_heads=NUM_HEADS)
    out2 = edge_encoder(dist2, path2, emb_weight, max_len=MAX_LEN,
                        num_heads=NUM_HEADS)
    out2 = jax.block_until_ready(out2)
    assert out2.shape == (B2, X2, Y2, NUM_HEADS)
    assert jnp.allclose(out2, ref2, atol=2e-4, rtol=2e-4)

    print("KERNEL_OK")
</pallas_src>

<mosaic_0001>
module attributes {stable_mosaic.version = 11 : i64} {
  func.func @edge_encoder_kernel(%arg0: i32, %arg1: memref<8x128xf32, #tpu.memory_space<vmem>>, %arg2: memref<128x128xf32, #tpu.memory_space<vmem>>, %arg3: memref<1x128xi32, #tpu.memory_space<vmem>>, %arg4: memref<8x128xf32, #tpu.memory_space<vmem>>) attributes {dimension_semantics = [#tpu.dimension_semantics<parallel>], iteration_bounds = array<i64: 1>, scalar_prefetch = 0 : i64, scratch_operands = 0 : i64, tpu.core_type = #tpu.core_type<tc>, window_params = [{pipeline_mode = #tpu.pipeline_mode<synchronous>, transform_indices = @transform_0, window_bounds = array<i64: 8, 128>}, {transform_indices = @transform_1, window_bounds = array<i64: 128, 128>}, {transform_indices = @transform_2, window_bounds = array<i64: 1, 128>}, {transform_indices = @transform_3, window_bounds = array<i64: 8, 128>}]} {
    %c0 = arith.constant 0 : index
    %c0_0 = arith.constant 0 : index
    %0 = vector.load %arg1[%c0, %c0_0] : memref<8x128xf32, #tpu.memory_space<vmem>>, vector<8x128xf32>
    %c0_1 = arith.constant 0 : index
    %c0_2 = arith.constant 0 : index
    %1 = vector.load %arg2[%c0_1, %c0_2] : memref<128x128xf32, #tpu.memory_space<vmem>>, vector<128x128xf32>
    %cst = arith.constant dense<0.000000e+00> : vector<8x128xf32>
    %2 = tpu.matmul %0, %1, %cst {dimension_numbers = #tpu.dot_dimension_numbers<[1], [1], [0], [0], [0, 0, 1, 0], [], []>} : vector<8x128xf32>, vector<128x128xf32>, vector<8x128xf32> -> vector<8x128xf32>
    %c0_3 = arith.constant 0 : index
    %c0_4 = arith.constant 0 : index
    %3 = vector.load %arg3[%c0_3, %c0_4] : memref<1x128xi32, #tpu.memory_space<vmem>>, vector<1x128xi32>
    %4 = arith.sitofp %3 : vector<1x128xi32> to vector<1x128xf32>
    %cst_5 = arith.constant 1.000000e+00 : f32
    %cst_6 = arith.constant 4.000000e+00 : f32
    %5 = vector.broadcast %cst_5 : f32 to vector<1x128xf32>
    %6 = arith.maximumf %5, %4 : vector<1x128xf32>
    %7 = vector.broadcast %cst_6 : f32 to vector<1x128xf32>
    %8 = arith.minimumf %7, %6 : vector<1x128xf32>
    %9 = tpu.reciprocal %8 : vector<1x128xf32> -> vector<1x128xf32>
    %10 = vector.broadcast %9 : vector<1x128xf32> to vector<8x128xf32>
    %11 = arith.mulf %2, %10 : vector<8x128xf32>
    %c0_7 = arith.constant 0 : index
    %c0_8 = arith.constant 0 : index
    %12 = vector.load %arg4[%c0_7, %c0_8] : memref<8x128xf32, #tpu.memory_space<vmem>>, vector<8x128xf32>
    tpu.vector_store %arg4[%c0_7, %c0_8], %11 {strides = array<i32>} : memref<8x128xf32, #tpu.memory_space<vmem>>, vector<8x128xf32>,
    return
  }
  func.func @transform_0(%arg0: i32) -> (i32, i32) {
    %c0_i32 = arith.constant 0 : i32
    %c0_i32_0 = arith.constant 0 : i32
    %c0_i32_1 = arith.constant 0 : i32
    return %c0_i32, %c0_i32_0 : i32, i32
  }
  func.func @transform_1(%arg0: i32) -> (i32, i32) {
    %c0_i32 = arith.constant 0 : i32
    %c0_i32_0 = arith.constant 0 : i32
    return %arg0, %c0_i32 : i32, i32
  }
  func.func @transform_2(%arg0: i32) -> (i32, i32) {
    %c0_i32 = arith.constant 0 : i32
    %c0_i32_0 = arith.constant 0 : i32
    return %c0_i32, %arg0 : i32, i32
  }
  func.func @transform_3(%arg0: i32) -> (i32, i32) {
    %c0_i32 = arith.constant 0 : i32
    %c0_i32_0 = arith.constant 0 : i32
    return %c0_i32, %arg0 : i32, i32
  }
}

</mosaic_0001>

<bundles_post_ra>
// kernel: tpu_custom_call.1
= control target key start
LH: loop header
LB: loop body
LE: loop exit
PB: predicated region body
PF: predicated region fallthrough
CT: control target
= control target key end

     0   :  { %8 = vsyncpa [#allocation3], 0  ;;  %s245_s0 = inlined_call_operand.hbm [shape: f32[8,128], index: 0, kind: input, shape index: {}]   ;;  %s246_s1 = inlined_call_operand.hbm [shape: f32[128,128], index: 1, kind: input, shape index: {}]   ;;  %s247_s2 = inlined_call_operand.vmem [shape: s32[1,128], index: 2, kind: input, shape index: {}]   ;;  %s248_s3 = inlined_call_operand.hbm [shape: f32[8,128], index: 3, kind: output, shape index: {}]  }
   0x1   :  { %9 = vsyncpa [#allocation6], 0 }
   0x2   :  { %10 = vsyncpa [#allocation4], 0  ;;  %s16_s14 = sshll.u32 %s245_s0, 4  ;;  %s208_s15 = smov [#allocation2]   ;;  %s17_s14 = int_to_ptr.hbm [resolvable:$true] %s16_s14 }
   0x3   :  { %s18_s16 = sshll.u32 %s208_s15, 4  ;;  %s26_s19 = sshll.u32 %s246_s1, 4  ;;  %s19_s16 = int_to_ptr.vmem [resolvable:$true] %s18_s16  ;;  %s27_s19 = int_to_ptr.hbm [resolvable:$true] %s26_s19 }
   0x4   :  { %21 = dma.hbm_to_vmem [thread:$0]  %s17_s14, 128, %s19_s16, [#allocation3]  }
   0x5   :  { %s209_s20 = smov [#allocation5]   ;;  %s210_s22 = smov 128  }
   0x6   :  { %s28_s21 = sshll.u32 %s209_s20, 4  ;;  %s211_s23 = smov 8   ;;  %s29_s21 = int_to_ptr.vmem [resolvable:$true] %s28_s21 }
   0x7   :  { %34 = dma.hbm_to_vmem [thread:$0]  %s27_s19, 2048, %s29_s21, [#allocation6], %s210_s22, %s210_s22, %s211_s23  }
   0x8   :  { %202 = dma.done.wait [#allocation3], 128  }
   0x9   :  { %203 = vsyncadd [#allocation3], 4294967168 }
   0xa   :  { %204 = dma.done.wait [#allocation6], 2048  }
   0xb   :  { %205 = vsyncadd [#allocation6], 4294965248  ;;  %v61_v0 = vld [vmem:[#allocation5 + $0x78] sm:$0xff]  ;;  %v60_v1 = vld [vmem:[#allocation5 + $0x70] sm:$0xff]  ;;  %s112_s27 = sshll.u32 %s248_s3, 4  ;;  %s113_s27 = int_to_ptr.hbm [resolvable:$true] %s112_s27 }
   0xc   :  { %62 = vmatpush.xpose.msra.mxu0 %v61_v0  ;;  %v59_v2 = vld [vmem:[#allocation5 + $0x68] sm:$0xff]  ;;  %v58_v3 = vld [vmem:[#allocation5 + $0x60] sm:$0xff]  ;;  %v57_v4 = vld [vmem:[#allocation5 + $0x58] sm:$0xff] }
   0xd   :  { %v56_v5 = vld [vmem:[#allocation5 + $0x50] sm:$0xff]  ;;  %v55_v6 = vld [vmem:[#allocation5 + $0x48] sm:$0xff]  ;;  %v54_v7 = vld [vmem:[#allocation5 + $0x40] sm:$0xff] }
   0xe   :  { %v53_v8 = vld [vmem:[#allocation5 + $0x38] sm:$0xff]  ;;  %v52_v9 = vld [vmem:[#allocation5 + $0x30] sm:$0xff]  ;;  %v51_v10 = vld [vmem:[#allocation5 + $0x28] sm:$0xff] }
   0xf   :  { %v50_v11 = vld [vmem:[#allocation5 + $0x20] sm:$0xff]  ;;  %v49_v12 = vld [vmem:[#allocation5 + $0x18] sm:$0xff]  ;;  %v48_v13 = vld [vmem:[#allocation5 + $0x10] sm:$0xff] }
  0x10   :  { %63 = vmatpush.xpose.msra.mxu0 %v60_v1  ;;  %v47_v14 = vld [vmem:[#allocation5 + $0x8] sm:$0xff]  ;;  %v46_v15 = vld [vmem:[#allocation5] sm:$0xff]  ;;  %v45_v16 = vld [vmem:[#allocation2] sm:$0xff] }
  0x11   :  { %v82_v17 = vld [vmem:[%s247_s2] sm:$0x1]  ;;  %s212_s2 = smov [#allocation7]  }
  0x12   :  { %v83_v18 = vcvt.s32.f32 %v82_v17  ;;  %s110_s24 = sshll.u32 %s212_s2, 4  ;;  %s111_s24 = int_to_ptr.vmem [resolvable:$true] %s110_s24 }
  0x14   :  { %64 = vmatpush.xpose.msra.mxu0 %v59_v2  ;;  %v84_v19 = vmax.f32 %v83_v18, 1.0 }
  0x16   :  { %v85_v20 = vmin.f32 %v84_v19, 4.0 }
  0x18   :  { %65 = vmatpush.xpose.msra.mxu0 %v58_v3  ;;  %128 = vrcp.f32 %v85_v20  ;;  %vm91_vm0 = vweird.f32 %v85_v20  ;;  %v97_v25 = vand.u32 2147483648, %v85_v20  ;;  %v95_v27 = vand.u32 2147483647, %v85_v20 }
  0x1a   :  { %v98_v28 = vor.u32 1.1754944e-38, %v97_v25  ;;  %vm96_vm3 = vcmp.eq.f32.partialorder %v95_v27, 8.507059e+37 }
  0x1c   :  { %66 = vmatpush.xpose.msra.mxu0 %v57_v4 }
  0x1e   :  { %v129_v21 = vpop.eup %128 }
  0x1f   :  { %v87_v22 = vmul.f32 %v129_v21, %v85_v20  ;;  %vm92_vm1 = vweird.f32 %v129_v21 }
  0x20   :  { %67 = vmatpush.xpose.msra.mxu0 %v56_v5  ;;  %vm93_vm2 = vmor %vm91_vm0, %vm92_vm1 }
  0x21   :  { %v88_v23 = vsub.f32 1.0, %v87_v22 }
  0x23   :  { %v89_v24 = vmul.f32 %v129_v21, %v88_v23 }
  0x24   :  { %68 = vmatpush.xpose.msra.mxu0 %v55_v6 }
  0x25   :  { %v90_v26 = vadd.f32 %v129_v21, %v89_v24 }
  0x27   :  { %v94_v29 = vsel %vm93_vm2, %v129_v21, %v90_v26 }
  0x28   :  { %69 = vmatpush.xpose.msra.mxu0 %v54_v7  ;;  %v99_v30 = vsel %vm96_vm3, %v98_v28, %v94_v29 }
  0x29   :  { %v101_v31 = vperm.slane %v99_v30, 0 }
  0x2c   :  { %70 = vmatpush.xpose.msra.mxu0 %v53_v8 }
  0x30   :  { %71 = vmatpush.xpose.msra.mxu0 %v52_v9 }
  0x34   :  { %72 = vmatpush.xpose.msra.mxu0 %v51_v10 }
  0x38   :  { %73 = vmatpush.xpose.msra.mxu0 %v50_v11 }
  0x3c   :  { %74 = vmatpush.xpose.msra.mxu0 %v49_v12 }
  0x40   :  { %75 = vmatpush.xpose.msra.mxu0 %v48_v13 }
  0x44   :  { %76 = vmatpush.xpose.msra.mxu0 %v47_v14 }
  0x48   :  { %77 = vmatpush.xpose.msra.mxu0 %v46_v15 }
  0x4b   :  { %78 = vmatmul.f32.vlgmr.msra.gmra.mxu0 %v45_v16 }
  0xc8   :  { %v79_v32 = vpop.f32.mrf.mxu0 }
  0xc9   :  { %v103_v33 = vmul.f32 %v101_v31, %v79_v32 }
  0xcb   :  { %104 = vst [vmem:[#allocation7] sm:$0xff] %v103_v33 }
  0xcc   :  { %115 = dma.vmem_to_hbm [thread:$0]  %s111_s24, 128, %s113_s27, [#allocation4]  }
  0xcd   :  { %206 = dma.done.wait [#allocation4], 128  }
  0xce   :  { %207 = vsyncadd [#allocation4], 4294967168 }
  0xcf   :  { %120 = vsyncpa [#allocation3], 1 }
  0xd0   :  { %121 = vsyncpa [#allocation6], 1 }
  0xd1   :  { %122 = vsyncpa [#allocation4], 1 }

</bundles_post_ra>
